<compile_context>
chip_gen: v7x
topology: tpu7x:2x2x1
jax: 0.10.0
libtpu: 0.0.40
codegen_flags: <defaults>
</compile_context>

<pallas_src>
import jax
import jax.numpy as jnp
from jax.experimental import pallas as pl
from jax.experimental.pallas import tpu as pltpu

HIDDEN1 = 100        # first hidden width in the PyTorch module
HIDDEN2 = 128
HIDDEN1_PAD = 128    # lane-aligned padding of the first hidden width


def _round_up(n, m):
    return (n + m - 1) // m * m


def _mlp_kernel(x_ref, w1_ref, b1_ref, w2_ref, b2_ref, w3_ref, b3_ref, o_ref):
    # bf16 cast done in-kernel (VPU is idle, cast hides under the DMA) so the
    # wrapper never materializes a bf16 copy of x in HBM.
    x = x_ref[...].astype(jnp.bfloat16)

    # Layer 1: Linear(in_features, 128-padded) + ReLU.  bf16 operands, f32 acc.
    h1 = jnp.dot(x, w1_ref[...], preferred_element_type=jnp.float32)
    h1 = jnp.maximum(h1 + b1_ref[...], 0.0)

    # Layer 2: Linear(128, 128) + ReLU.  Padded rows of w2 multiply exact zeros.
    h2 = jnp.dot(h1.astype(jnp.bfloat16), w2_ref[...],
                 preferred_element_type=jnp.float32)
    h2 = jnp.maximum(h2 + b2_ref[...], 0.0)

    # Output layer: Linear(128, out_features), stored unpadded.  A narrow
    # masked store is far cheaper here than 16x f32 write amplification.
    out = jnp.dot(h2.astype(jnp.bfloat16), w3_ref[...],
                  preferred_element_type=jnp.float32)
    o_ref[...] = (out + b3_ref[...]).astype(o_ref.dtype)


def prepare_params(params):
    """One-time operand prep, hoisted out of the per-call path.

    Zero-pads HIDDEN1 100->128 (w1 cols, b1, w2 rows) and casts matmul operands
    to bf16.  ReLU(0)=0 keeps the padding numerically exact."""
    in_f = params["w1"].shape[0]
    out_f = params["w3"].shape[1]
    w1 = (jnp.zeros((in_f, HIDDEN1_PAD), jnp.float32)
          .at[:, :HIDDEN1].set(params["w1"]).astype(jnp.bfloat16))
    b1 = jnp.zeros((1, HIDDEN1_PAD), jnp.float32).at[:, :HIDDEN1].set(params["b1"])
    w2 = (jnp.zeros((HIDDEN1_PAD, HIDDEN2), jnp.float32)
          .at[:HIDDEN1, :].set(params["w2"]).astype(jnp.bfloat16))
    b2 = params["b2"].reshape(1, HIDDEN2).astype(jnp.float32)
    w3 = params["w3"].astype(jnp.bfloat16)                 # (128, out_f), no lane pad
    b3 = params["b3"].reshape(1, out_f).astype(jnp.float32)
    return {"w1": w1, "b1": b1, "w2": w2, "b2": b2, "w3": w3, "b3": b3}


def _choose_tb(b8, in_f, out_f, tb):
    """Batch tile: large enough to amortize ~0.35us/step pipeline overhead,
    >= 2 grid blocks when possible (v7x megacore), and small enough that the
    double-buffered tiles fit a conservative VMEM budget on every generation."""
    TB = min(tb, b8)
    if TB >= b8 and b8 > 8:                      # force >= 2 grid blocks
        TB = _round_up(pl.cdiv(b8, 2), 8)
    # ~12 MiB cap: 2x double-buffered f32 x/out tiles + f32 hidden temporaries.
    # Keeps us under v5e's 16 MiB scoped default (no vmem_limit override needed)
    # and far under v7x's 64 MiB physical VMEM.
    bytes_per_row = 4 * (2 * in_f + 2 * out_f + 3 * HIDDEN1_PAD)
    max_tb = max(8, ((12 << 20) // bytes_per_row) // 8 * 8)
    TB = min(TB, max_tb)
    if TB >= 256:
        TB = (TB // 256) * 256                   # full 256-wide MXU occupancy
    else:
        TB = _round_up(TB, 8)
    return TB


def net_forward(x, prepped, *, tb=1024):
    """x: [B, in_features] float32.  prepped: output of prepare_params()."""
    B, in_f = x.shape
    out_f = prepped["w3"].shape[1]

    # Pad rows only to a multiple of 8 (sublane granularity); any ragged last
    # grid block is masked by Pallas, so no TB-granularity copy of x.
    b8 = _round_up(B, 8)
    x_in = x if b8 == B else jnp.pad(x, ((0, b8 - B), (0, 0)))

    TB = _choose_tb(b8, in_f, out_f, tb)
    grid = (pl.cdiv(b8, TB),)

    # Tiny weights/biases stay VMEM-resident across all grid steps (constant
    # index_map => DMA'd once).  Single-buffering them (pl.Buffered(1)) would
    # shave a little VMEM for very large in_f; skipped here as footprint is tiny.
    resident = lambda shape: pl.BlockSpec(shape, lambda i: (0, 0))

    out = pl.pallas_call(
        _mlp_kernel,
        out_shape=jax.ShapeDtypeStruct((b8, out_f), jnp.float32),
        grid=grid,
        in_specs=[
            pl.BlockSpec((TB, in_f), lambda i: (i, 0)),     # x: tiled over batch
            resident(prepped["w1"].shape), resident(prepped["b1"].shape),
            resident(prepped["w2"].shape), resident(prepped["b2"].shape),
            resident(prepped["w3"].shape), resident(prepped["b3"].shape),
        ],
        out_specs=pl.BlockSpec((TB, out_f), lambda i: (i, 0)),
        compiler_params=pltpu.CompilerParams(
            dimension_semantics=("parallel",)),
    )(x_in, prepped["w1"], prepped["b1"], prepped["w2"], prepped["b2"],
      prepped["w3"], prepped["b3"])

    # Row slice only when B needed padding; keep net_forward inside a larger
    # jit so XLA fuses this slice into the consumer.
    return out if b8 == B else out[:B]


def init_params(key, in_features, out_features):
    """Deterministic init mimicking PyTorch Linear (uniform(+/- 1/sqrt(fan_in)))."""
    ks = jax.random.split(key, 6)

    def linear(kw, kb, fan_in, fan_out):
        bound = 1.0 / jnp.sqrt(float(fan_in))
        # Stored already transposed to [fan_in, fan_out] for the kernel.
        w = jax.random.uniform(kw, (fan_in, fan_out), jnp.float32, -bound, bound)
        b = jax.random.uniform(kb, (1, fan_out), jnp.float32, -bound, bound)
        return w, b

    w1, b1 = linear(ks[0], ks[1], in_features, HIDDEN1)
    w2, b2 = linear(ks[2], ks[3], HIDDEN1, HIDDEN2)
    w3, b3 = linear(ks[4], ks[5], HIDDEN2, out_features)
    return {"w1": w1, "b1": b1, "w2": w2, "b2": b2, "w3": w3, "b3": b3}


def reference_forward(x, p):
    """Pure-JAX reference mirroring the kernel's bf16-operand / f32-accumulate math."""
    q = lambda a: a.astype(jnp.bfloat16).astype(jnp.float32)
    h1 = jnp.maximum(q(x) @ q(p["w1"]) + p["b1"], 0.0)
    h2 = jnp.maximum(q(h1) @ q(p["w2"]) + p["b2"], 0.0)
    return q(h2) @ q(p["w3"]) + p["b3"]


if __name__ == "__main__":
    in_features, out_features, batch = 32, 8, 16

    key = jax.random.PRNGKey(0)
    kx, kp = jax.random.split(key)
    x = jax.random.normal(kx, (batch, in_features), jnp.float32)
    params = init_params(kp, in_features, out_features)
    prepped = prepare_params(params)          # one-time weight prep (hoisted)

    fwd = jax.jit(net_forward)
    out = jax.block_until_ready(fwd(x, prepped))

    ref = reference_forward(x, params)
    assert out.shape == (batch, out_features)
    assert jnp.allclose(out, ref, atol=1e-2, rtol=1e-2), (
        f"max abs diff {jnp.max(jnp.abs(out - ref))}")

    print("KERNEL_OK")
</pallas_src>

<mosaic_0001>
module attributes {stable_mosaic.version = 11 : i64} {
  func.func @_mlp_kernel(%arg0: i32, %arg1: memref<8x32xf32, #tpu.memory_space<vmem>>, %arg2: memref<32x128xbf16, #tpu.memory_space<vmem>>, %arg3: memref<1x128xf32, #tpu.memory_space<vmem>>, %arg4: memref<128x128xbf16, #tpu.memory_space<vmem>>, %arg5: memref<1x128xf32, #tpu.memory_space<vmem>>, %arg6: memref<128x8xbf16, #tpu.memory_space<vmem>>, %arg7: memref<1x8xf32, #tpu.memory_space<vmem>>, %arg8: memref<8x8xf32, #tpu.memory_space<vmem>>) attributes {dimension_semantics = [#tpu.dimension_semantics<parallel>], iteration_bounds = array<i64: 2>, scalar_prefetch = 0 : i64, scratch_operands = 0 : i64, tpu.core_type = #tpu.core_type<tc>, window_params = [{transform_indices = @transform_0, window_bounds = array<i64: 8, 32>}, {pipeline_mode = #tpu.pipeline_mode<synchronous>, transform_indices = @transform_1, window_bounds = array<i64: 32, 128>}, {pipeline_mode = #tpu.pipeline_mode<synchronous>, transform_indices = @transform_2, window_bounds = array<i64: 1, 128>}, {pipeline_mode = #tpu.pipeline_mode<synchronous>, transform_indices = @transform_3, window_bounds = array<i64: 128, 128>}, {pipeline_mode = #tpu.pipeline_mode<synchronous>, transform_indices = @transform_4, window_bounds = array<i64: 1, 128>}, {pipeline_mode = #tpu.pipeline_mode<synchronous>, transform_indices = @transform_5, window_bounds = array<i64: 128, 8>}, {pipeline_mode = #tpu.pipeline_mode<synchronous>, transform_indices = @transform_6, window_bounds = array<i64: 1, 8>}, {transform_indices = @transform_7, window_bounds = array<i64: 8, 8>}]} {
    %c0 = arith.constant 0 : index
    %c0_0 = arith.constant 0 : index
    %0 = vector.load %arg1[%c0, %c0_0] : memref<8x32xf32, #tpu.memory_space<vmem>>, vector<8x32xf32>
    %1 = arith.truncf %0 : vector<8x32xf32> to vector<8x32xbf16>
    %c0_1 = arith.constant 0 : index
    %c0_2 = arith.constant 0 : index
    %2 = vector.load %arg2[%c0_1, %c0_2] : memref<32x128xbf16, #tpu.memory_space<vmem>>, vector<32x128xbf16>
    %cst = arith.constant dense<0.000000e+00> : vector<8x128xf32>
    %3 = tpu.matmul %1, %2, %cst {dimension_numbers = #tpu.dot_dimension_numbers<[1], [0], [0], [1], [0, 0, 1, 1], [], []>} : vector<8x32xbf16>, vector<32x128xbf16>, vector<8x128xf32> -> vector<8x128xf32>
    %c0_3 = arith.constant 0 : index
    %c0_4 = arith.constant 0 : index
    %4 = vector.load %arg3[%c0_3, %c0_4] : memref<1x128xf32, #tpu.memory_space<vmem>>, vector<1x128xf32>
    %5 = vector.broadcast %4 : vector<1x128xf32> to vector<8x128xf32>
    %6 = arith.addf %3, %5 : vector<8x128xf32>
    %cst_5 = arith.constant 0.000000e+00 : f32
    %7 = vector.broadcast %cst_5 : f32 to vector<8x128xf32>
    %8 = arith.maximumf %6, %7 : vector<8x128xf32>
    %9 = arith.truncf %8 : vector<8x128xf32> to vector<8x128xbf16>
    %c0_6 = arith.constant 0 : index
    %c0_7 = arith.constant 0 : index
    %10 = vector.load %arg4[%c0_6, %c0_7] : memref<128x128xbf16, #tpu.memory_space<vmem>>, vector<128x128xbf16>
    %cst_8 = arith.constant dense<0.000000e+00> : vector<8x128xf32>
    %11 = tpu.matmul %9, %10, %cst_8 {dimension_numbers = #tpu.dot_dimension_numbers<[1], [0], [0], [1], [0, 0, 1, 1], [], []>} : vector<8x128xbf16>, vector<128x128xbf16>, vector<8x128xf32> -> vector<8x128xf32>
    %c0_9 = arith.constant 0 : index
    %c0_10 = arith.constant 0 : index
    %12 = vector.load %arg5[%c0_9, %c0_10] : memref<1x128xf32, #tpu.memory_space<vmem>>, vector<1x128xf32>
    %13 = vector.broadcast %12 : vector<1x128xf32> to vector<8x128xf32>
    %14 = arith.addf %11, %13 : vector<8x128xf32>
    %cst_11 = arith.constant 0.000000e+00 : f32
    %15 = vector.broadcast %cst_11 : f32 to vector<8x128xf32>
    %16 = arith.maximumf %14, %15 : vector<8x128xf32>
    %17 = arith.truncf %16 : vector<8x128xf32> to vector<8x128xbf16>
    %c0_12 = arith.constant 0 : index
    %c0_13 = arith.constant 0 : index
    %18 = vector.load %arg6[%c0_12, %c0_13] : memref<128x8xbf16, #tpu.memory_space<vmem>>, vector<128x8xbf16>
    %cst_14 = arith.constant dense<0.000000e+00> : vector<8x8xf32>
    %19 = tpu.matmul %17, %18, %cst_14 {dimension_numbers = #tpu.dot_dimension_numbers<[1], [0], [0], [1], [0, 0, 1, 1], [], []>} : vector<8x128xbf16>, vector<128x8xbf16>, vector<8x8xf32> -> vector<8x8xf32>
    %c0_15 = arith.constant 0 : index
    %c0_16 = arith.constant 0 : index
    %20 = vector.load %arg7[%c0_15, %c0_16] : memref<1x8xf32, #tpu.memory_space<vmem>>, vector<1x8xf32>
    %21 = vector.broadcast %20 : vector<1x8xf32> to vector<8x8xf32>
    %22 = arith.addf %19, %21 : vector<8x8xf32>
    %c0_17 = arith.constant 0 : index
    %c0_18 = arith.constant 0 : index
    %23 = vector.load %arg8[%c0_17, %c0_18] : memref<8x8xf32, #tpu.memory_space<vmem>>, vector<8x8xf32>
    tpu.vector_store %arg8[%c0_17, %c0_18], %22 {strides = array<i32>} : memref<8x8xf32, #tpu.memory_space<vmem>>, vector<8x8xf32>,
    return
  }
  func.func @transform_0(%arg0: i32) -> (i32, i32) {
    %c0_i32 = arith.constant 0 : i32
    %c0_i32_0 = arith.constant 0 : i32
    return %arg0, %c0_i32 : i32, i32
  }
  func.func @transform_1(%arg0: i32) -> (i32, i32) {
    %c0_i32 = arith.constant 0 : i32
    %c0_i32_0 = arith.constant 0 : i32
    %c0_i32_1 = arith.constant 0 : i32
    return %c0_i32, %c0_i32_0 : i32, i32
  }
  func.func @transform_2(%arg0: i32) -> (i32, i32) {
    %c0_i32 = arith.constant 0 : i32
    %c0_i32_0 = arith.constant 0 : i32
    %c0_i32_1 = arith.constant 0 : i32
    return %c0_i32, %c0_i32_0 : i32, i32
  }
  func.func @transform_3(%arg0: i32) -> (i32, i32) {
    %c0_i32 = arith.constant 0 : i32
    %c0_i32_0 = arith.constant 0 : i32
    %c0_i32_1 = arith.constant 0 : i32
    return %c0_i32, %c0_i32_0 : i32, i32
  }
  func.func @transform_4(%arg0: i32) -> (i32, i32) {
    %c0_i32 = arith.constant 0 : i32
    %c0_i32_0 = arith.constant 0 : i32
    %c0_i32_1 = arith.constant 0 : i32
    return %c0_i32, %c0_i32_0 : i32, i32
  }
  func.func @transform_5(%arg0: i32) -> (i32, i32) {
    %c0_i32 = arith.constant 0 : i32
    %c0_i32_0 = arith.constant 0 : i32
    %c0_i32_1 = arith.constant 0 : i32
    return %c0_i32, %c0_i32_0 : i32, i32
  }
  func.func @transform_6(%arg0: i32) -> (i32, i32) {
    %c0_i32 = arith.constant 0 : i32
    %c0_i32_0 = arith.constant 0 : i32
    %c0_i32_1 = arith.constant 0 : i32
    return %c0_i32, %c0_i32_0 : i32, i32
  }
  func.func @transform_7(%arg0: i32) -> (i32, i32) {
    %c0_i32 = arith.constant 0 : i32
    %c0_i32_0 = arith.constant 0 : i32
    return %arg0, %c0_i32 : i32, i32
  }
}

</mosaic_0001>

<bundles_post_ra>
// kernel: net_forward.1
= control target key start
LH: loop header
LB: loop body
LE: loop exit
PB: predicated region body
PF: predicated region fallthrough
CT: control target
= control target key end

     0   :  { %12 = vsyncpa [#allocation3], 0  ;;  %s880_s24 = smov 0   ;;  %s1024_s0 = inlined_call_operand.vmem [shape: f32[16,32], index: 0, kind: input, shape index: {}]   ;;  %s1025_s1 = inlined_call_operand.hbm [shape: bf16[32,128], index: 1, kind: input, shape index: {}]   ;;  %s1026_s2 = inlined_call_operand.vmem [shape: f32[1,128], index: 2, kind: input, shape index: {}]   ;;  %s1027_s3 = inlined_call_operand.vmem [shape: bf16[128,128], index: 3, kind: input, shape index: {}]   ;;  %s1028_s4 = inlined_call_operand.vmem [shape: f32[1,128], index: 4, kind: input, shape index: {}]   ;;  %s1029_s5 = inlined_call_operand.vmem [shape: bf16[128,8], index: 5, kind: input, shape index: {}]   ;;  %s1030_s6 = inlined_call_operand.vmem [shape: f32[1,8], index: 6, kind: input, shape index: {}]   ;;  %s1031_s7 = inlined_call_operand.vmem [shape: f32[16,8], index: 7, kind: output, shape index: {}]  }
   0x1 LB: > { %s886_s25 = sadd.s32 4294967295, %s833_s24   ;;  %p654_p0 = scmp.ge.s32.totalorder %s833_s24, 1  ;;  %s833_s24 = sphi %s880_s24, %s18_s24  }
   0x2   : > { %p201_p1 = scmp.lt.s32.totalorder %s833_s24, 3  ;;  %s835_s26 = smov [#allocation2]  }
   0x3   : > { %s213_s27 = sshll.u32 %s835_s26, 4  ;;  %p1032_p3 = scmp.eq.s32.totalorder %s886_s25, 0  ;;  %s214_s27 = int_to_ptr.vmem [resolvable:$true] %s213_s27 }
   0x4   : > { %p890_p2 = pnand %p654_p0, %p201_p1  ;;  %s795_s9 = scalar_lea.hbm %s1025_s1, 256 }
   0x5   : > { %p796_p6 = scmp.ne.s32.totalorder %s1025_s1, %s795_s9  ;;  %p802_p10 = scmp.lt.u32.totalorder %s795_s9, %s1025_s1 }
   0x6   : > { %s1034_s28 = scalar_select %p890_p2, 1, 0 }
   0x7   : > { %p758_p4 = pneg %p890_p2 }
   0x9   : > { %p899_p5 = pnand %p1032_p3, %p758_p4 }
   0xb   : > { %p797_p7 = pneg %p899_p5 }
   0xd   : > { %p798_p8 = pnand %p797_p7, %p796_p6 }
   0xf   : > { %p799_p9 = pneg %p798_p8 }
  0x11   : > { %p804_p11 = pnand %p802_p10, %p799_p9 }
  0x13   : > { %807 = shalt.err (!%p804_p11)
}
  0x14   : > { %s808_s14 = scalar_lea.vmem %s214_s27, 256  ;;  %p816_p1 = scmp.lt.s32.totalorder %s214_s27, %s214_s27 }
  0x15   : > { %p809_p12 = scmp.ne.s32.totalorder %s214_s27, %s808_s14  ;;  %p817_p4 = scmp.lt.s32.totalorder %s808_s14, %s808_s14 }
  0x17   : > { %p811_p13 = pnand %p809_p12, %p797_p7  ;;  %p818_p3 = por %p817_p4, %p816_p1 }
  0x19   : > { %p812_p0 = pneg %p811_p13 }
  0x1b   : > { %p819_p2 = pnand %p818_p3, %p812_p0 }
  0x1d   : > { %822 = shalt.err (!%p819_p2)
}
  0x1e   : > { %s836_s15 = smov 64   ;;  %s837_s16 = smov 4  }
  0x1f   : > { %761 = dma.hbm_to_vmem [thread:$0]  (!%p899_p5), %s1025_s1, 256, %s214_s27, [#allocation3], %s836_s15, %s836_s15, %s837_s16  }
  0x20   : > { %p1036_p6 = scmp.ne.s32.totalorder %s1034_s28, 0 }
  0x21   : > { %p1037_p8 = scmp.eq.s32.totalorder (!%p1036_p6), %s886_s25, 0 }
  0x22   : > { %251 = sbr.rel (%p1036_p6) target bundleno = 703 (0x2bf), region = 48 }
  0x29   : > { %828 = dma.done.wait (%p1037_p8), [#allocation3], 256   ;;  %p1038_p7 = pmov %p1037_p8 }
  0x2a   : > { %p281_p2 = scmp.lt.s32.totalorder %s886_s25, 1  ;;  %v838_v0 = vmov 0.0   ;;  %vm839_vm0 = vmmov 0   ;;  %v777_v1 = vld [vmem:[#allocation2] sm:$0xff]   ;;  %v778_v2 = vld [vmem:[#allocation2 + $0x8] sm:$0xff]   ;;  %vm315_vm1 = vcmask 261120  }
  0x2b   : > { %830 = vsyncadd (%p1038_p7), [#allocation3], 4294967040  ;;  %706 = vmatprep.subr.bf16.mxu0 %v838_v0  ;;  %710 = vmatprep.mubr.msk.bf16.mxu0 %vm839_vm0, %v838_v0  ;;  %v779_v4 = vld [vmem:[%s1027_s3] sm:$0xff]   ;;  %v780_v6 = vld [vmem:[%s1027_s3 + $0x8] sm:$0xff]   ;;  %vm585_vm2 = vcmask 64512  }
  0x2c   : > { %s1040_s25 = smov (!%p281_p2, %s886_s25), 1  ;;  %714 = vmatprep.subr.bf16.mxu1 %v838_v0  ;;  %730 = vmatprep.mubr.msk.bf16.mxu1 %vm839_vm0, %v838_v0  ;;  %v781_v7 = vld [vmem:[%s1027_s3 + $0x10] sm:$0xff]   ;;  %v782_v8 = vld [vmem:[%s1027_s3 + $0x18] sm:$0xff]   ;;  %v783_v9 = vld [vmem:[%s1027_s3 + $0x20] sm:$0xff]  }
  0x2d   : > { %s659_s19 = sshll.u32 %s1040_s25, 3  ;;  %707 = vmatpush3.bf16.msra.mxu0 %v777_v1  ;;  %715 = vmatpush3.bf16.msra.mxu1 %v779_v4  ;;  %v784_v10 = vld [vmem:[%s1027_s3 + $0x28] sm:$0xff]   ;;  %v785_v11 = vld [vmem:[%s1027_s3 + $0x30] sm:$0xff]   ;;  %v786_v12 = vld [vmem:[%s1027_s3 + $0x38] sm:$0xff]  }
  0x2e   : > { %s284_s22 = scalar_lea.vmem %s1024_s0, %s659_s19  ;;  %708 = vmatprep.subr.bf16.mxu0 %v838_v0  ;;  %716 = vmatprep.subr.bf16.mxu1 %v838_v0  ;;  %v787_v13 = vld [vmem:[%s1029_s5] sm:$0xff]   ;;  %v788_v14 = vld [vmem:[%s1029_s5 + $0x8] sm:$0xff]   ;;  %v789_v15 = vld [vmem:[%s1029_s5 + $0x10] sm:$0xff]   ;;  %s288_s23 = scalar_lea.vmem %s1031_s7, %s659_s19 }
  0x2f   : > { %v290_v3 = vld [vmem:[%s284_s22] sm:$0xff]  ;;  %v790_v16 = vld [vmem:[%s1029_s5 + $0x18] sm:$0xff]   ;;  %v792_v18 = vld [vmem:[%s1029_s5 + $0x28] sm:$0xff]  }
  0x30   : > { %v291_v5 = vpack.c.bf16 %v290_v3, %v290_v3  ;;  %v791_v17 = vld [vmem:[%s1029_s5 + $0x20] sm:$0xff]   ;;  %v793_v27 = vld [vmem:[%s1029_s5 + $0x30] sm:$0xff]   ;;  %v794_v28 = vld [vmem:[%s1029_s5 + $0x38] sm:$0xff]  }
  0x31   : > { %709 = vmatpush3.bf16.msra.mxu0 %v778_v2  ;;  %717 = vmatpush3.bf16.msra.mxu1 %v780_v6  ;;  %v661_v19 = vld [vmem:[%s1026_s2] ss:$0 sm:$0xff] }
  0x32   : > { %734 = vmatprep.subr.bf16.mxu0 %v838_v0  ;;  %718 = vmatprep.subr.bf16.mxu1 %v838_v0  ;;  %v665_v29 = vld [vmem:[%s1028_s4] ss:$0 sm:$0xff] }
  0x33   : > { %v674_v37 = vld [vmem:[%s1030_s6] ss:$0 sm:$0xff] }
  0x34   : > { %711 = vmatmul.mubr.msk.bf16.vlgmr.msra.gmra.mrb[0].mxu0 %vm315_vm1, %v291_v5 }
  0x35   : > { %750 = vmatprep.mubr.msk.bf16.mxu0 %vm839_vm0, %v838_v0  ;;  %719 = vmatpush3.bf16.msra.mxu1 %v781_v7 }
  0x36   : > { %720 = vmatprep.subr.bf16.mxu1 %v838_v0  ;;  %735 = vmatpush3.bf16.msra.mxu0 %v787_v13 }
  0x37   : > { %736 = vmatprep.subr.bf16.mxu0 %v838_v0 }
  0x39   : > { %721 = vmatpush3.bf16.msra.mxu1 %v782_v8 }
  0x3a   : > { %722 = vmatprep.subr.bf16.mxu1 %v838_v0  ;;  %737 = vmatpush3.bf16.msra.mxu0 %v788_v14 }
  0x3b   : > { %738 = vmatprep.subr.bf16.mxu0 %v838_v0 }
  0x3d   : > { %723 = vmatpush3.bf16.msra.mxu1 %v783_v9 }
  0x3e   : > { %724 = vmatprep.subr.bf16.mxu1 %v838_v0  ;;  %739 = vmatpush3.bf16.msra.mxu0 %v789_v15 }
  0x3f   : > { %740 = vmatprep.subr.bf16.mxu0 %v838_v0 }
  0x41   : > { %725 = vmatpush3.bf16.msra.mxu1 %v784_v10 }
  0x42   : > { %726 = vmatprep.subr.bf16.mxu1 %v838_v0  ;;  %741 = vmatpush3.bf16.msra.mxu0 %v790_v16 }
  0x43   : > { %742 = vmatprep.subr.bf16.mxu0 %v838_v0 }
  0x45   : > { %727 = vmatpush3.bf16.msra.mxu1 %v785_v11 }
  0x46   : > { %728 = vmatprep.subr.bf16.mxu1 %v838_v0  ;;  %743 = vmatpush3.bf16.msra.mxu0 %v791_v17 }
  0x47   : > { %744 = vmatprep.subr.bf16.mxu0 %v838_v0 }
  0x49   : > { %729 = vmatpush3.bf16.msra.mxu1 %v786_v12 }
  0x4a   : > { %745 = vmatpush3.bf16.msra.mxu0 %v792_v18 }
  0x4b   : > { %746 = vmatprep.subr.bf16.mxu0 %v838_v0 }
  0x4e   : > { %747 = vmatpush3.bf16.msra.mxu0 %v793_v27 }
  0x4f   : > { %748 = vmatprep.subr.bf16.mxu0 %v838_v0 }
  0x52   : > { %749 = vmatpush3.bf16.msra.mxu0 %v794_v28 }
 0x107   : > { %v353_v20 = vpop.f32.mrb[0].mxu0 }
 0x108   : > { %v354_v21 = vadd.f32 %v661_v19, %v353_v20  ;;  %v712_v22 = vpop.f32.mrb[1].mxu0 }
 0x109   : > { %v356_v23 = vpop.f32.mrb[2].mxu0 }
 0x10a   : > { %v359_v24 = vmax.f32 %v354_v21, 0.0  ;;  %v713_v25 = vpop.f32.mrb[3].mxu0 }
 0x10c   : > { %v360_v26 = vpack.c.bf16 %v359_v24, %v359_v24 }
 0x10e   : > { %731 = vmatmul.mubr.bf16.vlgmr.msra.gmra.mrb[0].mxu1 %v360_v26 }
 0x1e1   : > { %v466_v30 = vpop.f32.mrb[0].mxu1 }
 0x1e2   : > { %v467_v31 = vadd.f32 %v665_v29, %v466_v30  ;;  %v732_v32 = vpop.f32.mrb[1].mxu1 }
 0x1e3   : > { %v469_v33 = vpop.f32.mrb[2].mxu1 }
 0x1e4   : > { %v472_v34 = vmax.f32 %v467_v31, 0.0  ;;  %v733_v35 = vpop.f32.mrb[3].mxu1 }
 0x1e6   : > { %v473_v36 = vpack.c.bf16 %v472_v34, %v472_v34 }
 0x1e8   : > { %751 = vmatmul.mubr.bf16.vlgmr.msra.gmra.mrb[4].mxu0 %v473_v36 }
 0x2bb   : > { %v579_v38 = vpop.f32.mrb[4].mxu0 }
 0x2bc   : > { %v580_v39 = vadd.f32 %v674_v37, %v579_v38  ;;  %v752_v40 = vpop.f32.mrb[5].mxu0 }
 0x2bd   : > { %v582_v41 = vpop.f32.mrb[6].mxu0 }
 0x2be   : > { %586 = vst.msk [vmem:[%s288_s23] sm:$0xff] %vm585_vm2, %v580_v39  ;;  %v753_v42 = vpop.f32.mrb[7].mxu0 }
 0x2bf PF: > { %s18_s24 = sadd.s32 1, %s833_s24  }
 0x2c0   : > { %p15_p3 = scmp.ge.s32.totalorder %s18_s24, 4  }
 0x2c2   :  { %17 = sbr.rel (!%p15_p3) target bundleno = 1 (0x1), region = 83 }
 0x2c9   :  { %606 = vsyncpa [#allocation3], 1 }
 0x2ca   :  { %608 = vsyncpa [#allocation3 + $0x1], 1 }

</bundles_post_ra>
